<compile_context>
chip_gen: v5e
topology: v5e:2x2
jax: 0.10.0
libtpu: 0.0.40
codegen_flags: <defaults>
</compile_context>

<pallas_src>
import functools
import math

import jax
import jax.numpy as jnp
from jax.experimental import pallas as pl
from jax.experimental.pallas import tpu as pltpu


def cnngwp_kernel(w1_ref, const_ref, x6_ref, weff_ref, o_ref, *,
                  F, K, S6p, L2p, Lc, Bt):
    # Pooled output s covers conv outputs 2s and 2s+1, i.e. input taps
    # x[6s + k] (even branch) and x[6s + 3 + k] (odd branch).  In the
    # phase-major layout x6[b, j*S6p + p] = x[b, 6p + j], tap k of the even
    # branch reads phase row re = k % 6 shifted by qe = k // 6, and the odd
    # branch reads row (k+3) % 6 shifted by (k+3) // 6.
    taps = []
    for k in range(K):
        qe, re = divmod(k, 6)
        qo, ro = divmod(k + 3, 6)
        taps.append(((re, qe), (ro, qo)))

    tot = jnp.zeros((Bt, 1), jnp.float32)
    for c0 in range(0, L2p, Lc):
        w = min(Lc, L2p - c0)

        # Load each unique shifted phase slab once per chunk and keep it (and
        # the accumulators below) resident in vregs for the whole f/k loop.
        slabs = {}

        def slab(row, q, _c0=c0, _w=w, _slabs=slabs):
            key = (row, q)
            if key not in _slabs:
                start = row * S6p + q + _c0          # 128-aligned up to +q
                _slabs[key] = x6_ref[:, start:start + _w]        # (Bt, w)
            return _slabs[key]

        part = jnp.zeros((Bt, w), jnp.float32)
        for f in range(F):
            e = None
            o = None
            for k, (ke, ko) in enumerate(taps):
                wk = w1_ref[f * K + k]               # SMEM scalar -> splat
                te = wk * slab(*ke)
                to = wk * slab(*ko)
                e = te if e is None else e + te
                o = to if o is None else o + to
            m = jnp.maximum(e, o)                    # fused conv1 + maxpool
            # weff is zero beyond the valid L2 range, so padded lanes vanish.
            part = part + weff_ref[f:f + 1, c0:c0 + w] * m
        tot = tot + jnp.sum(part, axis=1, keepdims=True)

    o_ref[...] = (tot + const_ref[0]).astype(o_ref.dtype)


def cnngwp_forward(x, params):
    """x: (B, 1, L) float32 (NCW, like PyTorch Conv1d). Returns (B, 1)."""
    w1, b1, w2, b2, wd, bd = (params[k] for k in
                              ("w1", "b1", "w2", "b2", "wd", "bd"))
    B, C, L = x.shape
    assert C == 1
    F, _, K = w1.shape
    L1 = (L - K) // 3 + 1              # conv1 out (stride 3)
    L2 = L1 // 2                       # maxpool out (kernel 2, stride 2)
    L3 = L2 - K + 1                    # conv2 out (stride 1)
    assert L2 >= K and L3 >= 1

    def round_up(v, m):
        return (v + m - 1) // m * m

    L2p = round_up(L2, 128)            # lane-padded pooled length
    Lc = min(512, L2p)                 # strip-chunk width (review item 3)
    qmax = (K + 2) // 6                # largest phase-row shift used
    S6p = round_up(L2p + qmax, 128)    # per-phase lane stride (128-aligned)
    Lp = 6 * S6p

    # ---- batch tiling (review item 1) --------------------------------------
    Bt = 8 if B >= 8 else B            # sublane-dense blocks when possible
    Bpad = int(pl.cdiv(B, Bt)) * Bt
    grid = Bpad // Bt

    # ---- algebraic fold of conv2 + flatten + dense (review item 9) ---------
    hi = jax.lax.Precision.HIGHEST
    wd_fl = wd.reshape(F, L3)                       # PyTorch flatten order f_out*L3 + t
    mfold = jnp.einsum("oik,ot->ikt", w2, wd_fl, precision=hi)   # (f_in, k, t)
    weff = jnp.zeros((F, L2), jnp.float32)
    for k in range(K):
        weff = weff.at[:, k:k + L3].add(mfold[:, k, :])
    const = (jnp.sum(b1 * jnp.sum(weff, axis=1))    # conv1 bias (commutes with max)
             + jnp.sum(b2 * jnp.sum(wd_fl, axis=1)) # conv2 bias through dense
             + bd[0])
    weff_p = jnp.pad(weff, ((0, 0), (0, L2p - L2))) # zero-pad: padded lanes give 0

    # ---- lane-dense phase-major signal repack (review items 2, 10) ---------
    xf = x[:, 0, :]
    if L >= Lp:
        xf = xf[:, :Lp]
    else:
        xf = jnp.pad(xf, ((0, 0), (0, Lp - L)))
    # x6[b, j*S6p + p] = x[b, 6p + j]; one pad+reshape+transpose pass in XLA.
    x6 = jnp.transpose(xf.reshape(B, S6p, 6), (0, 2, 1)).reshape(B, Lp)
    if Bpad != B:
        x6 = jnp.pad(x6, ((0, Bpad - B), (0, 0)))

    w1_flat = w1.reshape(F * K).astype(jnp.float32)
    const_arr = jnp.reshape(const, (1,)).astype(jnp.float32)

    # ---- VMEM budget (review item 7) ----------------------------------------
    try:
        vmem_cap = int(getattr(pltpu.get_tpu_info(), "vmem_capacity_bytes",
                               64 * 2 ** 20))
    except Exception:
        vmem_cap = 64 * 2 ** 20        # conservative (v7x per-core VMEM)
    block_bytes = 4 * (Bt * Lp + F * L2p + Bt)          # one buffer each
    temp_bytes = 4 * (Bt * Lc * (2 * K + 6))            # slabs + accumulators
    vmem_needed = 2 * block_bytes + temp_bytes + (2 << 20)
    vmem_limit = int(min(vmem_cap * 3 // 4, max(32 * 2 ** 20, vmem_needed)))

    kernel = functools.partial(cnngwp_kernel, F=F, K=K, S6p=S6p, L2p=L2p,
                               Lc=Lc, Bt=Bt)
    out = pl.pallas_call(
        kernel,
        out_shape=jax.ShapeDtypeStruct((Bpad, 1), jnp.float32),
        grid=(grid,),
        in_specs=[
            pl.BlockSpec(memory_space=pltpu.MemorySpace.SMEM),  # w1  (F*K,)
            pl.BlockSpec(memory_space=pltpu.MemorySpace.SMEM),  # const (1,)
            pl.BlockSpec((Bt, Lp), lambda i: (i, 0)),           # signal block
            pl.BlockSpec((F, L2p), lambda i: (0, 0)),           # folded weight
        ],
        out_specs=pl.BlockSpec((Bt, 1), lambda i: (i, 0)),
        compiler_params=pltpu.CompilerParams(
            dimension_semantics=("parallel",),
            vmem_limit_bytes=vmem_limit),
    )(w1_flat, const_arr, x6, weff_p)
    return out[:B]


def init_params(key, F, K, flat):
    # Kaiming-normal-ish weights (fan_in, relu), small deterministic biases.
    # NOTE: the original module hard-codes the dense input dim per data_type
    # (438950 / 392250 / 79600); here it is derived from the synthetic shapes.
    ks = jax.random.split(key, 6)
    w1 = jax.random.normal(ks[0], (F, 1, K), jnp.float32) * math.sqrt(2.0 / (1 * K))
    b1 = jax.random.uniform(ks[1], (F,), jnp.float32, -1.0, 1.0) / math.sqrt(1 * K)
    w2 = jax.random.normal(ks[2], (F, F, K), jnp.float32) * math.sqrt(2.0 / (F * K))
    b2 = jax.random.uniform(ks[3], (F,), jnp.float32, -1.0, 1.0) / math.sqrt(F * K)
    wd = jax.random.normal(ks[4], (1, flat), jnp.float32) * math.sqrt(2.0 / flat)
    bd = jax.random.uniform(ks[5], (1,), jnp.float32, -1.0, 1.0) / math.sqrt(flat)
    return dict(w1=w1, b1=b1, w2=w2, b2=b2, wd=wd, bd=bd)


def reference_forward(x, p):
    """Pure-JAX (XLA) reference of the PyTorch forward for verification."""
    hi = jax.lax.Precision.HIGHEST
    y = jax.lax.conv_general_dilated(x, p["w1"], window_strides=(3,),
                                     padding="VALID",
                                     dimension_numbers=("NCH", "OIH", "NCH"),
                                     precision=hi)
    y = y + p["b1"][None, :, None]
    y = jax.lax.reduce_window(y, -jnp.inf, jax.lax.max,
                              window_dimensions=(1, 1, 2),
                              window_strides=(1, 1, 2), padding="VALID")
    y = jax.lax.conv_general_dilated(y, p["w2"], window_strides=(1,),
                                     padding="VALID",
                                     dimension_numbers=("NCH", "OIH", "NCH"),
                                     precision=hi)
    y = y + p["b2"][None, :, None]
    flat = y.reshape(y.shape[0], -1)
    return jnp.dot(flat, p["wd"].T, precision=hi) + p["bd"][None, :]


if __name__ == "__main__":
    root = jax.random.PRNGKey(0)
    fwd = jax.jit(cnngwp_forward)

    def run_case(name, case_id, B, F, K, L):
        L1 = (L - K) // 3 + 1
        L2 = L1 // 2
        L3 = L2 - K + 1
        flat = F * L3
        key = jax.random.fold_in(root, case_id)
        pkey, xkey = jax.random.split(key)
        params = init_params(pkey, F, K, flat)
        x = jax.random.normal(xkey, (B, 1, L), jnp.float32)
        out = jax.block_until_ready(fwd(x, params))
        ref = reference_forward(x, params)
        assert out.shape == (B, 1)
        if not jnp.allclose(out, ref, atol=2e-3, rtol=2e-3):
            raise AssertionError(f"{name}: Pallas/XLA mismatch:\n{out}\nvs\n{ref}")

    # filter=8, kernel=5, L=194 -> conv1 64 -> pool 32 -> conv2 28 -> flat 224
    run_case("small", 0, B=2, F=8, K=5, L=194)
    # wider filter count, odd kernel, B=3
    run_case("wide", 1, B=3, F=32, K=7, L=400)
    # B=10 -> Bt=8, padded tail block, grid=2 (exercises multi-step pipeline)
    run_case("batched", 2, B=10, F=8, K=5, L=200)
    print("KERNEL_OK")
</pallas_src>

<mosaic_0001>
module attributes {stable_mosaic.version = 11 : i64} {
  func.func @cnngwp_kernel(%arg0: i32, %arg1: memref<40xf32, #tpu.memory_space<smem>>, %arg2: memref<1xf32, #tpu.memory_space<smem>>, %arg3: memref<2x1536xf32, #tpu.memory_space<vmem>>, %arg4: memref<8x128xf32, #tpu.memory_space<vmem>>, %arg5: memref<2x1xf32, #tpu.memory_space<vmem>>) attributes {dimension_semantics = [#tpu.dimension_semantics<parallel>], iteration_bounds = array<i64: 1>, scalar_prefetch = 0 : i64, scratch_operands = 0 : i64, tpu.core_type = #tpu.core_type<tc>, window_params = [{transform_indices = @transform_0, window_bounds = array<i64: 40>}, {transform_indices = @transform_1, window_bounds = array<i64: 1>}, {transform_indices = @transform_2, window_bounds = array<i64: 2, 1536>}, {pipeline_mode = #tpu.pipeline_mode<synchronous>, transform_indices = @transform_3, window_bounds = array<i64: 8, 128>}, {transform_indices = @transform_4, window_bounds = array<i64: 2, 1>}]} {
    %cst = arith.constant 0.000000e+00 : f32
    %0 = vector.broadcast %cst : f32 to vector<2x1xf32>
    %cst_0 = arith.constant 0.000000e+00 : f32
    %1 = vector.broadcast %cst_0 : f32 to vector<2x128xf32>
    %c0 = arith.constant 0 : index
    %2 = memref.load %arg1[%c0] : memref<40xf32, #tpu.memory_space<smem>>
    %c0_1 = arith.constant 0 : index
    %c0_2 = arith.constant 0 : index
    %3 = vector.load %arg3[%c0_1, %c0_2] : memref<2x1536xf32, #tpu.memory_space<vmem>>, vector<2x128xf32>
    %4 = vector.broadcast %2 : f32 to vector<2x128xf32>
    %5 = arith.mulf %4, %3 : vector<2x128xf32>
    %c0_3 = arith.constant 0 : index
    %c768 = arith.constant 768 : index
    %6 = vector.load %arg3[%c0_3, %c768] : memref<2x1536xf32, #tpu.memory_space<vmem>>, vector<2x128xf32>
    %7 = vector.broadcast %2 : f32 to vector<2x128xf32>
    %8 = arith.mulf %7, %6 : vector<2x128xf32>
    %c1 = arith.constant 1 : index
    %9 = memref.load %arg1[%c1] : memref<40xf32, #tpu.memory_space<smem>>
    %c0_4 = arith.constant 0 : index
    %c256 = arith.constant 256 : index
    %10 = vector.load %arg3[%c0_4, %c256] : memref<2x1536xf32, #tpu.memory_space<vmem>>, vector<2x128xf32>
    %11 = vector.broadcast %9 : f32 to vector<2x128xf32>
    %12 = arith.mulf %11, %10 : vector<2x128xf32>
    %c0_5 = arith.constant 0 : index
    %c1024 = arith.constant 1024 : index
    %13 = vector.load %arg3[%c0_5, %c1024] : memref<2x1536xf32, #tpu.memory_space<vmem>>, vector<2x128xf32>
    %14 = vector.broadcast %9 : f32 to vector<2x128xf32>
    %15 = arith.mulf %14, %13 : vector<2x128xf32>
    %16 = arith.addf %5, %12 : vector<2x128xf32>
    %17 = arith.addf %8, %15 : vector<2x128xf32>
    %c2 = arith.constant 2 : index
    %18 = memref.load %arg1[%c2] : memref<40xf32, #tpu.memory_space<smem>>
    %c0_6 = arith.constant 0 : index
    %c512 = arith.constant 512 : index
    %19 = vector.load %arg3[%c0_6, %c512] : memref<2x1536xf32, #tpu.memory_space<vmem>>, vector<2x128xf32>
    %20 = vector.broadcast %18 : f32 to vector<2x128xf32>
    %21 = arith.mulf %20, %19 : vector<2x128xf32>
    %c0_7 = arith.constant 0 : index
    %c1280 = arith.constant 1280 : index
    %22 = vector.load %arg3[%c0_7, %c1280] : memref<2x1536xf32, #tpu.memory_space<vmem>>, vector<2x128xf32>
    %23 = vector.broadcast %18 : f32 to vector<2x128xf32>
    %24 = arith.mulf %23, %22 : vector<2x128xf32>
    %25 = arith.addf %16, %21 : vector<2x128xf32>
    %26 = arith.addf %17, %24 : vector<2x128xf32>
    %c3 = arith.constant 3 : index
    %27 = memref.load %arg1[%c3] : memref<40xf32, #tpu.memory_space<smem>>
    %28 = vector.broadcast %27 : f32 to vector<2x128xf32>
    %29 = arith.mulf %28, %6 : vector<2x128xf32>
    %c0_8 = arith.constant 0 : index
    %c1_9 = arith.constant 1 : index
    %30 = vector.load %arg3[%c0_8, %c1_9] : memref<2x1536xf32, #tpu.memory_space<vmem>>, vector<2x128xf32>
    %31 = vector.broadcast %27 : f32 to vector<2x128xf32>
    %32 = arith.mulf %31, %30 : vector<2x128xf32>
    %33 = arith.addf %25, %29 : vector<2x128xf32>
    %34 = arith.addf %26, %32 : vector<2x128xf32>
    %c4 = arith.constant 4 : index
    %35 = memref.load %arg1[%c4] : memref<40xf32, #tpu.memory_space<smem>>
    %36 = vector.broadcast %35 : f32 to vector<2x128xf32>
    %37 = arith.mulf %36, %13 : vector<2x128xf32>
    %c0_10 = arith.constant 0 : index
    %c257 = arith.constant 257 : index
    %38 = vector.load %arg3[%c0_10, %c257] : memref<2x1536xf32, #tpu.memory_space<vmem>>, vector<2x128xf32>
    %39 = vector.broadcast %35 : f32 to vector<2x128xf32>
    %40 = arith.mulf %39, %38 : vector<2x128xf32>
    %41 = arith.addf %33, %37 : vector<2x128xf32>
    %42 = arith.addf %34, %40 : vector<2x128xf32>
    %43 = arith.maximumf %41, %42 : vector<2x128xf32>
    %c0_11 = arith.constant 0 : index
    %c0_12 = arith.constant 0 : index
    %44 = vector.load %arg4[%c0_11, %c0_12] : memref<8x128xf32, #tpu.memory_space<vmem>>, vector<1x128xf32>
    %45 = vector.broadcast %44 : vector<1x128xf32> to vector<2x128xf32>
    %46 = arith.mulf %45, %43 : vector<2x128xf32>
    %47 = arith.addf %1, %46 : vector<2x128xf32>
    %c5 = arith.constant 5 : index
    %48 = memref.load %arg1[%c5] : memref<40xf32, #tpu.memory_space<smem>>
    %49 = vector.broadcast %48 : f32 to vector<2x128xf32>
    %50 = arith.mulf %49, %3 : vector<2x128xf32>
    %51 = vector.broadcast %48 : f32 to vector<2x128xf32>
    %52 = arith.mulf %51, %6 : vector<2x128xf32>
    %c6 = arith.constant 6 : index
    %53 = memref.load %arg1[%c6] : memref<40xf32, #tpu.memory_space<smem>>
    %54 = vector.broadcast %53 : f32 to vector<2x128xf32>
    %55 = arith.mulf %54, %10 : vector<2x128xf32>
    %56 = vector.broadcast %53 : f32 to vector<2x128xf32>
    %57 = arith.mulf %56, %13 : vector<2x128xf32>
    %58 = arith.addf %50, %55 : vector<2x128xf32>
    %59 = arith.addf %52, %57 : vector<2x128xf32>
    %c7 = arith.constant 7 : index
    %60 = memref.load %arg1[%c7] : memref<40xf32, #tpu.memory_space<smem>>
    %61 = vector.broadcast %60 : f32 to vector<2x128xf32>
    %62 = arith.mulf %61, %19 : vector<2x128xf32>
    %63 = vector.broadcast %60 : f32 to vector<2x128xf32>
    %64 = arith.mulf %63, %22 : vector<2x128xf32>
    %65 = arith.addf %58, %62 : vector<2x128xf32>
    %66 = arith.addf %59, %64 : vector<2x128xf32>
    %c8 = arith.constant 8 : index
    %67 = memref.load %arg1[%c8] : memref<40xf32, #tpu.memory_space<smem>>
    %68 = vector.broadcast %67 : f32 to vector<2x128xf32>
    %69 = arith.mulf %68, %6 : vector<2x128xf32>
    %70 = vector.broadcast %67 : f32 to vector<2x128xf32>
    %71 = arith.mulf %70, %30 : vector<2x128xf32>
    %72 = arith.addf %65, %69 : vector<2x128xf32>
    %73 = arith.addf %66, %71 : vector<2x128xf32>
    %c9 = arith.constant 9 : index
    %74 = memref.load %arg1[%c9] : memref<40xf32, #tpu.memory_space<smem>>
    %75 = vector.broadcast %74 : f32 to vector<2x128xf32>
    %76 = arith.mulf %75, %13 : vector<2x128xf32>
    %77 = vector.broadcast %74 : f32 to vector<2x128xf32>
    %78 = arith.mulf %77, %38 : vector<2x128xf32>
    %79 = arith.addf %72, %76 : vector<2x128xf32>
    %80 = arith.addf %73, %78 : vector<2x128xf32>
    %81 = arith.maximumf %79, %80 : vector<2x128xf32>
    %c1_13 = arith.constant 1 : index
    %c0_14 = arith.constant 0 : index
    %82 = vector.load %arg4[%c1_13, %c0_14] : memref<8x128xf32, #tpu.memory_space<vmem>>, vector<1x128xf32>
    %83 = vector.broadcast %82 : vector<1x128xf32> to vector<2x128xf32>
    %84 = arith.mulf %83, %81 : vector<2x128xf32>
    %85 = arith.addf %47, %84 : vector<2x128xf32>
    %c10 = arith.constant 10 : index
    %86 = memref.load %arg1[%c10] : memref<40xf32, #tpu.memory_space<smem>>
    %87 = vector.broadcast %86 : f32 to vector<2x128xf32>
    %88 = arith.mulf %87, %3 : vector<2x128xf32>
    %89 = vector.broadcast %86 : f32 to vector<2x128xf32>
    %90 = arith.mulf %89, %6 : vector<2x128xf32>
    %c11 = arith.constant 11 : index
    %91 = memref.load %arg1[%c11] : memref<40xf32, #tpu.memory_space<smem>>
    %92 = vector.broadcast %91 : f32 to vector<2x128xf32>
    %93 = arith.mulf %92, %10 : vector<2x128xf32>
    %94 = vector.broadcast %91 : f32 to vector<2x128xf32>
    %95 = arith.mulf %94, %13 : vector<2x128xf32>
    %96 = arith.addf %88, %93 : vector<2x128xf32>
    %97 = arith.addf %90, %95 : vector<2x128xf32>
    %c12 = arith.constant 12 : index
    %98 = memref.load %arg1[%c12] : memref<40xf32, #tpu.memory_space<smem>>
    %99 = vector.broadcast %98 : f32 to vector<2x128xf32>
    %100 = arith.mulf %99, %19 : vector<2x128xf32>
    %101 = vector.broadcast %98 : f32 to vector<2x128xf32>
    %102 = arith.mulf %101, %22 : vector<2x128xf32>
    %103 = arith.addf %96, %100 : vector<2x128xf32>
    %104 = arith.addf %97, %102 : vector<2x128xf32>
    %c13 = arith.constant 13 : index
    %105 = memref.load %arg1[%c13] : memref<40xf32, #tpu.memory_space<smem>>
    %106 = vector.broadcast %105 : f32 to vector<2x128xf32>
    %107 = arith.mulf %106, %6 : vector<2x128xf32>
    %108 = vector.broadcast %105 : f32 to vector<2x128xf32>
    %109 = arith.mulf %108, %30 : vector<2x128xf32>
    %110 = arith.addf %103, %107 : vector<2x128xf32>
    %111 = arith.addf %104, %109 : vector<2x128xf32>
    %c14 = arith.constant 14 : index
    %112 = memref.load %arg1[%c14] : memref<40xf32, #tpu.memory_space<smem>>
    %113 = vector.broadcast %112 : f32 to vector<2x128xf32>
    %114 = arith.mulf %113, %13 : vector<2x128xf32>
    %115 = vector.broadcast %112 : f32 to vector<2x128xf32>
    %116 = arith.mulf %115, %38 : vector<2x128xf32>
    %117 = arith.addf %110, %114 : vector<2x128xf32>
    %118 = arith.addf %111, %116 : vector<2x128xf32>
    %119 = arith.maximumf %117, %118 : vector<2x128xf32>
    %c2_15 = arith.constant 2 : index
    %c0_16 = arith.constant 0 : index
    %120 = vector.load %arg4[%c2_15, %c0_16] : memref<8x128xf32, #tpu.memory_space<vmem>>, vector<1x128xf32>
    %121 = vector.broadcast %120 : vector<1x128xf32> to vector<2x128xf32>
    %122 = arith.mulf %121, %119 : vector<2x128xf32>
    %123 = arith.addf %85, %122 : vector<2x128xf32>
    %c15 = arith.constant 15 : index
    %124 = memref.load %arg1[%c15] : memref<40xf32, #tpu.memory_space<smem>>
    %125 = vector.broadcast %124 : f32 to vector<2x128xf32>
    %126 = arith.mulf %125, %3 : vector<2x128xf32>
    %127 = vector.broadcast %124 : f32 to vector<2x128xf32>
    %128 = arith.mulf %127, %6 : vector<2x128xf32>
    %c16 = arith.constant 16 : index
    %129 = memref.load %arg1[%c16] : memref<40xf32, #tpu.memory_space<smem>>
    %130 = vector.broadcast %129 : f32 to vector<2x128xf32>
    %131 = arith.mulf %130, %10 : vector<2x128xf32>
    %132 = vector.broadcast %129 : f32 to vector<2x128xf32>
    %133 = arith.mulf %132, %13 : vector<2x128xf32>
    %134 = arith.addf %126, %131 : vector<2x128xf32>
    %135 = arith.addf %128, %133 : vector<2x128xf32>
    %c17 = arith.constant 17 : index
    %136 = memref.load %arg1[%c17] : memref<40xf32, #tpu.memory_space<smem>>
    %137 = vector.broadcast %136 : f32 to vector<2x128xf32>
    %138 = arith.mulf %137, %19 : vector<2x128xf32>
    %139 = vector.broadcast %136 : f32 to vector<2x128xf32>
    %140 = arith.mulf %139, %22 : vector<2x128xf32>
    %141 = arith.addf %134, %138 : vector<2x128xf32>
    %142 = arith.addf %135, %140 : vector<2x128xf32>
    %c18 = arith.constant 18 : index
    %143 = memref.load %arg1[%c18] : memref<40xf32, #tpu.memory_space<smem>>
    %144 = vector.broadcast %143 : f32 to vector<2x128xf32>
    %145 = arith.mulf %144, %6 : vector<2x128xf32>
    %146 = vector.broadcast %143 : f32 to vector<2x128xf32>
    %147 = arith.mulf %146, %30 : vector<2x128xf32>
    %148 = arith.addf %141, %145 : vector<2x128xf32>
    %149 = arith.addf %142, %147 : vector<2x128xf32>
    %c19 = arith.constant 19 : index
    %150 = memref.load %arg1[%c19] : memref<40xf32, #tpu.memory_space<smem>>
    %151 = vector.broadcast %150 : f32 to vector<2x128xf32>
    %152 = arith.mulf %151, %13 : vector<2x128xf32>
    %153 = vector.broadcast %150 : f32 to vector<2x128xf32>
    %154 = arith.mulf %153, %38 : vector<2x128xf32>
    %155 = arith.addf %148, %152 : vector<2x128xf32>
    %156 = arith.addf %149, %154 : vector<2x128xf32>
    %157 = arith.maximumf %155, %156 : vector<2x128xf32>
    %c3_17 = arith.constant 3 : index
    %c0_18 = arith.constant 0 : index
    %158 = vector.load %arg4[%c3_17, %c0_18] : memref<8x128xf32, #tpu.memory_space<vmem>>, vector<1x128xf32>
    %159 = vector.broadcast %158 : vector<1x128xf32> to vector<2x128xf32>
    %160 = arith.mulf %159, %157 : vector<2x128xf32>
    %161 = arith.addf %123, %160 : vector<2x128xf32>
    %c20 = arith.constant 20 : index
    %162 = memref.load %arg1[%c20] : memref<40xf32, #tpu.memory_space<smem>>
    %163 = vector.broadcast %162 : f32 to vector<2x128xf32>
    %164 = arith.mulf %163, %3 : vector<2x128xf32>
    %165 = vector.broadcast %162 : f32 to vector<2x128xf32>
    %166 = arith.mulf %165, %6 : vector<2x128xf32>
    %c21 = arith.constant 21 : index
    %167 = memref.load %arg1[%c21] : memref<40xf32, #tpu.memory_space<smem>>
    %168 = vector.broadcast %167 : f32 to vector<2x128xf32>
    %169 = arith.mulf %168, %10 : vector<2x128xf32>
    %170 = vector.broadcast %167 : f32 to vector<2x128xf32>
    %171 = arith.mulf %170, %13 : vector<2x128xf32>
    %172 = arith.addf %164, %169 : vector<2x128xf32>
    %173 = arith.addf %166, %171 : vector<2x128xf32>
    %c22 = arith.constant 22 : index
    %174 = memref.load %arg1[%c22] : memref<40xf32, #tpu.memory_space<smem>>
    %175 = vector.broadcast %174 : f32 to vector<2x128xf32>
    %176 = arith.mulf %175, %19 : vector<2x128xf32>
    %177 = vector.broadcast %174 : f32 to vector<2x128xf32>
    %178 = arith.mulf %177, %22 : vector<2x128xf32>
    %179 = arith.addf %172, %176 : vector<2x128xf32>
    %180 = arith.addf %173, %178 : vector<2x128xf32>
    %c23 = arith.constant 23 : index
    %181 = memref.load %arg1[%c23] : memref<40xf32, #tpu.memory_space<smem>>
    %182 = vector.broadcast %181 : f32 to vector<2x128xf32>
    %183 = arith.mulf %182, %6 : vector<2x128xf32>
    %184 = vector.broadcast %181 : f32 to vector<2x128xf32>
    %185 = arith.mulf %184, %30 : vector<2x128xf32>
    %186 = arith.addf %179, %183 : vector<2x128xf32>
    %187 = arith.addf %180, %185 : vector<2x128xf32>
    %c24 = arith.constant 24 : index
    %188 = memref.load %arg1[%c24] : memref<40xf32, #tpu.memory_space<smem>>
    %189 = vector.broadcast %188 : f32 to vector<2x128xf32>
    %190 = arith.mulf %189, %13 : vector<2x128xf32>
    %191 = vector.broadcast %188 : f32 to vector<2x128xf32>
    %192 = arith.mulf %191, %38 : vector<2x128xf32>
    %193 = arith.addf %186, %190 : vector<2x128xf32>
    %194 = arith.addf %187, %192 : vector<2x128xf32>
    %195 = arith.maximumf %193, %194 : vector<2x128xf32>
    %c4_19 = arith.constant 4 : index
    %c0_20 = arith.constant 0 : index
    %196 = vector.load %arg4[%c4_19, %c0_20] : memref<8x128xf32, #tpu.memory_space<vmem>>, vector<1x128xf32>
    %197 = vector.broadcast %196 : vector<1x128xf32> to vector<2x128xf32>
    %198 = arith.mulf %197, %195 : vector<2x128xf32>
    %199 = arith.addf %161, %198 : vector<2x128xf32>
    %c25 = arith.constant 25 : index
    %200 = memref.load %arg1[%c25] : memref<40xf32, #tpu.memory_space<smem>>
    %201 = vector.broadcast %200 : f32 to vector<2x128xf32>
    %202 = arith.mulf %201, %3 : vector<2x128xf32>
    %203 = vector.broadcast %200 : f32 to vector<2x128xf32>
    %204 = arith.mulf %203, %6 : vector<2x128xf32>
    %c26 = arith.constant 26 : index
    %205 = memref.load %arg1[%c26] : memref<40xf32, #tpu.memory_space<smem>>
    %206 = vector.broadcast %205 : f32 to vector<2x128xf32>
    %207 = arith.mulf %206, %10 : vector<2x128xf32>
    %208 = vector.broadcast %205 : f32 to vector<2x128xf32>
    %209 = arith.mulf %208, %13 : vector<2x128xf32>
    %210 = arith.addf %202, %207 : vector<2x128xf32>
    %211 = arith.addf %204, %209 : vector<2x128xf32>
    %c27 = arith.constant 27 : index
    %212 = memref.load %arg1[%c27] : memref<40xf32, #tpu.memory_space<smem>>
    %213 = vector.broadcast %212 : f32 to vector<2x128xf32>
    %214 = arith.mulf %213, %19 : vector<2x128xf32>
    %215 = vector.broadcast %212 : f32 to vector<2x128xf32>
    %216 = arith.mulf %215, %22 : vector<2x128xf32>
    %217 = arith.addf %210, %214 : vector<2x128xf32>
    %218 = arith.addf %211, %216 : vector<2x128xf32>
    %c28 = arith.constant 28 : index
    %219 = memref.load %arg1[%c28] : memref<40xf32, #tpu.memory_space<smem>>
    %220 = vector.broadcast %219 : f32 to vector<2x128xf32>
    %221 = arith.mulf %220, %6 : vector<2x128xf32>
    %222 = vector.broadcast %219 : f32 to vector<2x128xf32>
    %223 = arith.mulf %222, %30 : vector<2x128xf32>
    %224 = arith.addf %217, %221 : vector<2x128xf32>
    %225 = arith.addf %218, %223 : vector<2x128xf32>
    %c29 = arith.constant 29 : index
    %226 = memref.load %arg1[%c29] : memref<40xf32, #tpu.memory_space<smem>>
    %227 = vector.broadcast %226 : f32 to vector<2x128xf32>
    %228 = arith.mulf %227, %13 : vector<2x128xf32>
    %229 = vector.broadcast %226 : f32 to vector<2x128xf32>
    %230 = arith.mulf %229, %38 : vector<2x128xf32>
    %231 = arith.addf %224, %228 : vector<2x128xf32>
    %232 = arith.addf %225, %230 : vector<2x128xf32>
    %233 = arith.maximumf %231, %232 : vector<2x128xf32>
    %c5_21 = arith.constant 5 : index
    %c0_22 = arith.constant 0 : index
    %234 = vector.load %arg4[%c5_21, %c0_22] : memref<8x128xf32, #tpu.memory_space<vmem>>, vector<1x128xf32>
    %235 = vector.broadcast %234 : vector<1x128xf32> to vector<2x128xf32>
    %236 = arith.mulf %235, %233 : vector<2x128xf32>
    %237 = arith.addf %199, %236 : vector<2x128xf32>
    %c30 = arith.constant 30 : index
    %238 = memref.load %arg1[%c30] : memref<40xf32, #tpu.memory_space<smem>>
    %239 = vector.broadcast %238 : f32 to vector<2x128xf32>
    %240 = arith.mulf %239, %3 : vector<2x128xf32>
    %241 = vector.broadcast %238 : f32 to vector<2x128xf32>
    %242 = arith.mulf %241, %6 : vector<2x128xf32>
    %c31 = arith.constant 31 : index
    %243 = memref.load %arg1[%c31] : memref<40xf32, #tpu.memory_space<smem>>
    %244 = vector.broadcast %243 : f32 to vector<2x128xf32>
    %245 = arith.mulf %244, %10 : vector<2x128xf32>
    %246 = vector.broadcast %243 : f32 to vector<2x128xf32>
    %247 = arith.mulf %246, %13 : vector<2x128xf32>
    %248 = arith.addf %240, %245 : vector<2x128xf32>
    %249 = arith.addf %242, %247 : vector<2x128xf32>
    %c32 = arith.constant 32 : index
    %250 = memref.load %arg1[%c32] : memref<40xf32, #tpu.memory_space<smem>>
    %251 = vector.broadcast %250 : f32 to vector<2x128xf32>
    %252 = arith.mulf %251, %19 : vector<2x128xf32>
    %253 = vector.broadcast %250 : f32 to vector<2x128xf32>
    %254 = arith.mulf %253, %22 : vector<2x128xf32>
    %255 = arith.addf %248, %252 : vector<2x128xf32>
    %256 = arith.addf %249, %254 : vector<2x128xf32>
    %c33 = arith.constant 33 : index
    %257 = memref.load %arg1[%c33] : memref<40xf32, #tpu.memory_space<smem>>
    %258 = vector.broadcast %257 : f32 to vector<2x128xf32>
    %259 = arith.mulf %258, %6 : vector<2x128xf32>
    %260 = vector.broadcast %257 : f32 to vector<2x128xf32>
    %261 = arith.mulf %260, %30 : vector<2x128xf32>
    %262 = arith.addf %255, %259 : vector<2x128xf32>
    %263 = arith.addf %256, %261 : vector<2x128xf32>
    %c34 = arith.constant 34 : index
    %264 = memref.load %arg1[%c34] : memref<40xf32, #tpu.memory_space<smem>>
    %265 = vector.broadcast %264 : f32 to vector<2x128xf32>
    %266 = arith.mulf %265, %13 : vector<2x128xf32>
    %267 = vector.broadcast %264 : f32 to vector<2x128xf32>
    %268 = arith.mulf %267, %38 : vector<2x128xf32>
    %269 = arith.addf %262, %266 : vector<2x128xf32>
    %270 = arith.addf %263, %268 : vector<2x128xf32>
    %271 = arith.maximumf %269, %270 : vector<2x128xf32>
    %c6_23 = arith.constant 6 : index
    %c0_24 = arith.constant 0 : index
    %272 = vector.load %arg4[%c6_23, %c0_24] : memref<8x128xf32, #tpu.memory_space<vmem>>, vector<1x128xf32>
    %273 = vector.broadcast %272 : vector<1x128xf32> to vector<2x128xf32>
    %274 = arith.mulf %273, %271 : vector<2x128xf32>
    %275 = arith.addf %237, %274 : vector<2x128xf32>
    %c35 = arith.constant 35 : index
    %276 = memref.load %arg1[%c35] : memref<40xf32, #tpu.memory_space<smem>>
    %277 = vector.broadcast %276 : f32 to vector<2x128xf32>
    %278 = arith.mulf %277, %3 : vector<2x128xf32>
    %279 = vector.broadcast %276 : f32 to vector<2x128xf32>
    %280 = arith.mulf %279, %6 : vector<2x128xf32>
    %c36 = arith.constant 36 : index
    %281 = memref.load %arg1[%c36] : memref<40xf32, #tpu.memory_space<smem>>
    %282 = vector.broadcast %281 : f32 to vector<2x128xf32>
    %283 = arith.mulf %282, %10 : vector<2x128xf32>
    %284 = vector.broadcast %281 : f32 to vector<2x128xf32>
    %285 = arith.mulf %284, %13 : vector<2x128xf32>
    %286 = arith.addf %278, %283 : vector<2x128xf32>
    %287 = arith.addf %280, %285 : vector<2x128xf32>
    %c37 = arith.constant 37 : index
    %288 = memref.load %arg1[%c37] : memref<40xf32, #tpu.memory_space<smem>>
    %289 = vector.broadcast %288 : f32 to vector<2x128xf32>
    %290 = arith.mulf %289, %19 : vector<2x128xf32>
    %291 = vector.broadcast %288 : f32 to vector<2x128xf32>
    %292 = arith.mulf %291, %22 : vector<2x128xf32>
    %293 = arith.addf %286, %290 : vector<2x128xf32>
    %294 = arith.addf %287, %292 : vector<2x128xf32>
    %c38 = arith.constant 38 : index
    %295 = memref.load %arg1[%c38] : memref<40xf32, #tpu.memory_space<smem>>
    %296 = vector.broadcast %295 : f32 to vector<2x128xf32>
    %297 = arith.mulf %296, %6 : vector<2x128xf32>
    %298 = vector.broadcast %295 : f32 to vector<2x128xf32>
    %299 = arith.mulf %298, %30 : vector<2x128xf32>
    %300 = arith.addf %293, %297 : vector<2x128xf32>
    %301 = arith.addf %294, %299 : vector<2x128xf32>
    %c39 = arith.constant 39 : index
    %302 = memref.load %arg1[%c39] : memref<40xf32, #tpu.memory_space<smem>>
    %303 = vector.broadcast %302 : f32 to vector<2x128xf32>
    %304 = arith.mulf %303, %13 : vector<2x128xf32>
    %305 = vector.broadcast %302 : f32 to vector<2x128xf32>
    %306 = arith.mulf %305, %38 : vector<2x128xf32>
    %307 = arith.addf %300, %304 : vector<2x128xf32>
    %308 = arith.addf %301, %306 : vector<2x128xf32>
    %309 = arith.maximumf %307, %308 : vector<2x128xf32>
    %c7_25 = arith.constant 7 : index
    %c0_26 = arith.constant 0 : index
    %310 = vector.load %arg4[%c7_25, %c0_26] : memref<8x128xf32, #tpu.memory_space<vmem>>, vector<1x128xf32>
    %311 = vector.broadcast %310 : vector<1x128xf32> to vector<2x128xf32>
    %312 = arith.mulf %311, %309 : vector<2x128xf32>
    %313 = arith.addf %275, %312 : vector<2x128xf32>
    %cst_27 = arith.constant dense<0.000000e+00> : vector<2xf32>
    %314 = vector.multi_reduction <add>, %313, %cst_27 [1] : vector<2x128xf32> to vector<2xf32>
    %315 = vector.shape_cast %314 : vector<2xf32> to vector<2x1xf32>
    %316 = arith.addf %0, %315 : vector<2x1xf32>
    %c0_28 = arith.constant 0 : index
    %317 = memref.load %arg2[%c0_28] : memref<1xf32, #tpu.memory_space<smem>>
    %318 = vector.broadcast %317 : f32 to vector<2x1xf32>
    %319 = arith.addf %316, %318 : vector<2x1xf32>
    %c0_29 = arith.constant 0 : index
    %c0_30 = arith.constant 0 : index
    %320 = vector.load %arg5[%c0_29, %c0_30] : memref<2x1xf32, #tpu.memory_space<vmem>>, vector<2x1xf32>
    tpu.vector_store %arg5[%c0_29, %c0_30], %319 {strides = array<i32>} : memref<2x1xf32, #tpu.memory_space<vmem>>, vector<2x1xf32>,
    return
  }
  func.func @transform_0(%arg0: i32) -> i32 {
    %c0_i32 = arith.constant 0 : i32
    %c0_i32_0 = arith.constant 0 : i32
    return %c0_i32 : i32
  }
  func.func @transform_1(%arg0: i32) -> i32 {
    %c0_i32 = arith.constant 0 : i32
    %c0_i32_0 = arith.constant 0 : i32
    return %c0_i32 : i32
  }
  func.func @transform_2(%arg0: i32) -> (i32, i32) {
    %c0_i32 = arith.constant 0 : i32
    %c0_i32_0 = arith.constant 0 : i32
    return %arg0, %c0_i32 : i32, i32
  }
  func.func @transform_3(%arg0: i32) -> (i32, i32) {
    %c0_i32 = arith.constant 0 : i32
    %c0_i32_0 = arith.constant 0 : i32
    %c0_i32_1 = arith.constant 0 : i32
    return %c0_i32, %c0_i32_0 : i32, i32
  }
  func.func @transform_4(%arg0: i32) -> (i32, i32) {
    %c0_i32 = arith.constant 0 : i32
    %c0_i32_0 = arith.constant 0 : i32
    return %arg0, %c0_i32 : i32, i32
  }
}

</mosaic_0001>

<bundles_post_ra>
// kernel: cnngwp_forward.1
= control target key start
LH: loop header
LB: loop body
LE: loop exit
PB: predicated region body
PF: predicated region fallthrough
CT: control target
= control target key end

     0   :  { %s975_s0 = inlined_call_operand.vmem [shape: f32[40], index: 0, kind: input, shape index: {}]   ;;  %s976_s1 = inlined_call_operand.<no memory space> [shape: f32[1], index: 1, kind: input, shape index: {}]   ;;  %s977_s2 = inlined_call_operand.vmem [shape: f32[2,1536], index: 2, kind: input, shape index: {}]   ;;  %s978_s3 = inlined_call_operand.vmem [shape: f32[8,128], index: 3, kind: input, shape index: {}]   ;;  %s979_s4 = inlined_call_operand.vmem [shape: f32[2,1], index: 4, kind: output, shape index: {}]  }
   0x1   :  { %981 = sst [smem:[#allocation7_spill]] %s976_s1 }
   0x2   :  { %982 = sst [smem:[#allocation8_spill]] %s979_s4 }
   0x3   :  { %10 = vsyncpa [#allocation4], 0  ;;  %s16_s17 = sshll.u32 %s975_s0, 4  ;;  %s478_s18 = smov [#allocation3]   ;;  %s17_s17 = int_to_ptr.vmem [resolvable:$true] %s16_s17 }
   0x4   :  { %19 = dma.vmem_to_smem %s17_s17, 16, %s478_s18, [#allocation4]  }
   0x5   :  { %476 = dma.done.wait [#allocation4], 16  }
   0x6   :  { %477 = vsyncadd [#allocation4], 4294967280 }
   0x7   :  { %30 = sfence }
   0x8   :  { %s508_s19 = sld [smem:[#allocation3 + $0x4]]  ;;  %v515_v0 = vld [vmem:[%s977_s2 + $0x4] sm:$0xf]  ;;  %v520_v1 = vld [vmem:[%s977_s2] sm:$0xf]  ;;  %s479_s9 = smov 127  }
   0x9   :  { %s417_s20 = sld [smem:[#allocation3 + $0x3]]  ;;  %v527_v2 = vld [vmem:[%s977_s2] sm:$0x3]  ;;  %v540_v6 = vld [vmem:[%s977_s2 + $0x4] sm:$0x3]  ;;  %vm63_vm0 = vcmask 1039360  }
   0xa   :  { %s510_s21 = sld [smem:[#allocation3]]  ;;  %v547_v9 = vld [vmem:[%s977_s2 + $0x8] sm:$0x3]  ;;  %v564_v14 = vld [vmem:[%s977_s2 + $0xc] sm:$0x3]  ;;  %vm400_vm1 = vcmask 1041408  }
   0xb   :  { %s522_s25 = sld [smem:[#allocation3 + $0x1]]  ;;  %v579_v20 = vld [vmem:[%s977_s2 + $0x10] sm:$0x3]  ;;  %vm408_vm2 = vcmask 1024  }
   0xc   :  { %s529_s28 = sld [smem:[#allocation3 + $0x2]] }
   0xd   :  { %s531_s29 = sld [smem:[#allocation3 + $0x9]] }
   0xe   :  { %v68_v3 = vstv %s508_s19  ;;  %s534_s30 = sld [smem:[#allocation3 + $0x8]] }
   0xf   :  { %v71_v4 = vmul.f32 %v515_v0, %v68_v3  ;;  %v54_v5 = vstv %s417_s20  ;;  %s559_s10 = sld [smem:[#allocation3 + $0x13]]  ;;  %v69_v22 = vmul.f32 %v68_v3, %v579_v20 }
  0x10   :  { %v57_v7 = vmul.f32 %v520_v1, %v54_v5  ;;  %v33_v8 = vstv %s510_s21  ;;  %s570_s13 = sld [smem:[#allocation3 + $0x12]]  ;;  %v55_v18 = vmul.f32 %v54_v5, %v564_v14 }
  0x11   :  { %74 = vrot.lane.b32.xlu1 %v71_v4, %s479_s9  ;;  %v34_v10 = vmul.f32 %v33_v8, %v527_v2  ;;  %v39_v11 = vstv %s522_s25  ;;  %s574_s14 = sld [smem:[#allocation3 + $0xd]] }
  0x12   :  { %60 = vrot.lane.b32.xlu0 %v57_v7, %s479_s9  ;;  %v40_v12 = vmul.f32 %v39_v11, %v540_v6  ;;  %v47_v13 = vstv %s529_s28  ;;  %s588_s17 = sld [smem:[#allocation3 + $0xe]] }
  0x13   :  { %v48_v15 = vmul.f32 %v47_v13, %v547_v9  ;;  %v114_v16 = vstv %s531_s29  ;;  %s596_s18 = sld [smem:[#allocation3 + $0x1c]] }
  0x14   :  { %v43_v17 = vadd.f32 %v40_v12, %v34_v10  ;;  %v102_v19 = vstv %s534_s30  ;;  %v116_v21 = vmul.f32 %v114_v16, %v515_v0  ;;  %s600_s19 = sld [smem:[#allocation3 + $0x18]]  ;;  %v115_v10 = vmul.f32 %v114_v16, %v579_v20 }
  0x15   :  { %v104_v24 = vmul.f32 %v102_v19, %v520_v1  ;;  %v204_v27 = vstv %s559_s10  ;;  %s610_s20 = sld [smem:[#allocation3 + $0x17]]  ;;  %v103_v4 = vmul.f32 %v102_v19, %v564_v14 }
  0x16   :  { %v51_v23 = vadd.f32 %v48_v15, %v43_v17  ;;  %v192_v29 = vstv %s570_s13  ;;  %v206_v31 = vmul.f32 %v204_v27, %v515_v0  ;;  %s616_s22 = sld [smem:[#allocation3 + $0x22]] }
  0x17   :  { %v147_v28 = vstv %s574_s14  ;;  %v194_v32 = vmul.f32 %v192_v29, %v520_v1  ;;  %s619_s23 = sld [smem:[#allocation3 + $0x21]] }
  0x18   :  { %v58_v25 = vadd.f32 %v55_v18, %v51_v23  ;;  %v149_v30 = vmul.f32 %v147_v28, %v520_v1  ;;  %v159_v33 = vstv %s588_s17  ;;  %s629_s24 = sld [smem:[#allocation3 + $0x1d]]  ;;  %v148_v59 = vmul.f32 %v147_v28, %v564_v14 }
  0x19   :  { %119 = vrot.lane.b32.xlu1 %v116_v21, %s479_s9  ;;  %v161_v34 = vmul.f32 %v159_v33, %v515_v0  ;;  %v282_v35 = vstv %s596_s18  ;;  %s638_s0 = sld [smem:[#allocation3 + $0x27]]  ;;  %v160_v63 = vmul.f32 %v159_v33, %v579_v20 }
  0x1a   :  { %v591_v26 = vadd.f32 %v69_v22, %v58_v25  ;;  %107 = vrot.lane.b32.xlu0 %v104_v24, %s479_s9  ;;  %152 = vrot.lane.b32.xlu2 %v149_v30, %s479_s9  ;;  %v249_v36 = vstv %s600_s19  ;;  %v284_v37 = vmul.f32 %v282_v35, %v520_v1  ;;  %s648_s26 = sld [smem:[#allocation3 + $0x26]]  ;;  %v193_v24 = vmul.f32 %v192_v29, %v564_v14 }
  0x1b   :  { %v251_v38 = vmul.f32 %v249_v36, %v515_v0  ;;  %v237_v39 = vstv %s610_s20  ;;  %s666_s27 = sld [smem:[#allocation3 + $0xa]]  ;;  %v205_v30 = vmul.f32 %v204_v27, %v579_v20 }
  0x1c   :  { %v239_v40 = vmul.f32 %v237_v39, %v520_v1  ;;  %v339_v41 = vstv %s616_s22  ;;  %s668_s5 = sld [smem:[#allocation3 + $0xb]] }
  0x1d   :  { %v327_v42 = vstv %s619_s23  ;;  %v341_v43 = vmul.f32 %v339_v41, %v515_v0  ;;  %s670_s6 = sld [smem:[#allocation3 + $0xc]] }
  0x1e   :  { %v329_v44 = vmul.f32 %v327_v42, %v520_v1  ;;  %v294_v45 = vstv %s629_s24  ;;  %s681_s7 = sld [smem:[#allocation3 + $0x5]] }
  0x1f   :  { %v296_v46 = vmul.f32 %v294_v45, %v515_v0  ;;  %v384_v47 = vstv %s638_s0  ;;  %s683_s8 = sld [smem:[#allocation3 + $0x6]] }
  0x20   :  { %v386_v48 = vmul.f32 %v384_v47, %v515_v0  ;;  %v372_v49 = vstv %s648_s26  ;;  %s691_s11 = sld [smem:[#allocation3 + $0xf]] }
  0x21   :  { %209 = vrot.lane.b32.xlu1 %v206_v31, %s479_s9  ;;  %v374_v50 = vmul.f32 %v372_v49, %v520_v1  ;;  %v131_v51 = vstv %s666_s27  ;;  %s695_s12 = sld [smem:[#allocation3 + $0x10]] }
  0x22   :  { %197 = vrot.lane.b32.xlu0 %v194_v32, %s479_s9  ;;  %164 = vrot.lane.b32.xlu2 %v161_v34, %s479_s9  ;;  %v135_v52 = vstv %s668_s5  ;;  %v132_v53 = vmul.f32 %v131_v51, %v527_v2  ;;  %s705_s14 = sld [smem:[#allocation3 + $0x11]] }
  0x23   :  { %v136_v54 = vmul.f32 %v135_v52, %v540_v6  ;;  %v141_v55 = vstv %s670_s6  ;;  %s718_s15 = sld [smem:[#allocation3 + $0x14]] }
  0x24   :  { %v142_v57 = vmul.f32 %v141_v55, %v547_v9  ;;  %v86_v60 = vstv %s681_s7  ;;  %s720_s16 = sld [smem:[#allocation3 + $0x15]] }
  0x25   :  { %v138_v56 = vadd.f32 %v136_v54, %v132_v53  ;;  %v90_v61 = vstv %s683_s8  ;;  %v87_v0 = vmul.f32 %v86_v60, %v527_v2  ;;  %s722_s30 = sld [smem:[#allocation3 + $0x19]]  ;;  %v36_v53 = vmul.f32 %v564_v14, %v33_v8  ;;  %v797_v8 = vld [vmem:[%s977_s2 + $0x14] sm:$0x3] }
  0x26   :  { %v91_v1 = vmul.f32 %v90_v61, %v540_v6  ;;  %v176_v18 = vstv %s691_s11  ;;  %s726_s17 = sld [smem:[#allocation3 + $0x1a]]  ;;  %v42_v54 = vmul.f32 %v579_v20, %v39_v11 }
  0x27   :  { %v144_v58 = vadd.f32 %v142_v57, %v138_v56  ;;  %v180_v19 = vstv %s695_s12  ;;  %v177_v21 = vmul.f32 %v176_v18, %v527_v2  ;;  %s736_s29 = sld [smem:[#allocation3 + $0x16]] }
  0x28   :  { %v93_v5 = vadd.f32 %v91_v1, %v87_v0  ;;  %v181_v22 = vmul.f32 %v180_v19, %v540_v6  ;;  %v186_v23 = vstv %s705_s14  ;;  %s739_s4 = sld [smem:[#allocation3 + $0x1b]]  ;;  %v137_v1 = vmul.f32 %v135_v52, %v579_v20 }
  0x29   :  { %287 = vrot.lane.b32.xlu1 %v284_v37, %s479_s9  ;;  %v150_v62 = vadd.f32 %v148_v59, %v144_v58  ;;  %v187_v28 = vmul.f32 %v186_v23, %v547_v9  ;;  %v221_v33 = vstv %s718_s15  ;;  %s752_s13 = sld [smem:[#allocation3 + $0x1e]]  ;;  %v238_v58 = vmul.f32 %v237_v39, %v564_v14 }
  0x2a   :  { %254 = vrot.lane.b32.xlu0 %v251_v38, %s479_s9  ;;  %242 = vrot.lane.b32.xlu2 %v239_v40, %s479_s9  ;;  %v183_v25 = vadd.f32 %v181_v22, %v177_v21  ;;  %v225_v34 = vstv %s720_s16  ;;  %v222_v29 = vmul.f32 %v221_v33, %v527_v2  ;;  %s762_s10 = sld [smem:[#allocation3 + $0x1f]]  ;;  %v295_v39 = vmul.f32 %v294_v45, %v579_v20 }
  0x2b   :  { %v716_v12 = vadd.f32 %v160_v63, %v150_v62  ;;  %v226_v37 = vmul.f32 %v225_v34, %v540_v6  ;;  %v266_v38 = vstv %s722_s30  ;;  %s774_s1 = sld [smem:[#allocation3 + $0x20]]  ;;  %v283_v62 = vmul.f32 %v282_v35, %v564_v14 }
  0x2c   :  { %v189_v31 = vadd.f32 %v187_v28, %v183_v25  ;;  %v270_v27 = vstv %s726_s17  ;;  %v250_v63 = vmul.f32 %v249_v36, %v579_v20  ;;  %s805_s25 = sld [smem:[#allocation3 + $0x23]]  ;;  %v133_v35 = vmul.f32 %v131_v51, %v564_v14 }
  0x2d   :  { %983 = sst [smem:[#allocation6_spill]] %s736_s29  ;;  %v271_v56 = vmul.f32 %v270_v27, %v540_v6  ;;  %v228_v59 = vadd.f32 %v226_v37, %v222_v29  ;;  %v50_v45 = vmul.f32 %v797_v8, %v47_v13  ;;  %v88_v51 = vmul.f32 %v86_v60, %v564_v14 }
  0x2e   :  { %v195_v32 = vadd.f32 %v193_v24, %v189_v31  ;;  %s813_s2 = sld [smem:[#allocation3 + $0x24]]  ;;  %v92_v52 = vmul.f32 %v90_v61, %v579_v20  ;;  %v143_v13 = vmul.f32 %v141_v55, %v797_v8  ;;  %v139_v60 = vadd.f32 %v137_v1, %v133_v35 }
  0x2f   :  { %s820_s18 = sld [smem:[#allocation3 + $0x25]]  ;;  %v328_v55 = vmul.f32 %v327_v42, %v564_v14  ;;  %v373_v35 = vmul.f32 %v372_v49, %v564_v14  ;;  %v182_v49 = vmul.f32 %v180_v19, %v579_v20  ;;  %v188_v19 = vmul.f32 %v186_v23, %v797_v8 }
  0x30   :  { %v764_v40 = vadd.f32 %v205_v30, %v195_v32  ;;  %s985_s15 = sld [smem:[#allocation7_spill]] }
  0x31   :  { %344 = vrot.lane.b32.xlu1 %v341_v43, %s479_s9  ;;  %v231_v43 = vstv %s736_s29  ;;  %v321_v24 = vstv %s774_s1  ;;  %s986_s17 = sld [smem:[#allocation8_spill]] }
  0x32   :  { %332 = vrot.lane.b32.xlu0 %v329_v44, %s479_s9  ;;  %299 = vrot.lane.b32.xlu2 %v296_v46, %s479_s9  ;;  %v267_v44 = vmul.f32 %v266_v38, %v527_v2  ;;  %v322_v31 = vmul.f32 %v321_v24, %v547_v9  ;;  %v356_v42 = vstv %s805_s25 }
  0x34   :  { %v273_v11 = vadd.f32 %v271_v56, %v267_v44  ;;  %v340_v44 = vmul.f32 %v339_v41, %v579_v20 }
  0x3a   :  { %389 = vrot.lane.b32.xlu0 %v386_v48, %s479_s9  ;;  %377 = vrot.lane.b32.xlu2 %v374_v50, %s479_s9  ;;  %s688_s9 = sld [smem:[#allocation3 + $0x7]]  ;;  %v232_v48 = vmul.f32 %v231_v43, %v547_v9  ;;  %v276_v50 = vstv %s739_s4 }
  0x3b   :  { %v277_v57 = vmul.f32 %v276_v50, %v547_v9 }
  0x3c   :  { %v234_v0 = vadd.f32 %v232_v48, %v228_v59  ;;  %v145_v59 = vadd.f32 %v143_v13, %v139_v60 }
  0x3d   :  { %v279_v36 = vadd.f32 %v277_v57, %v273_v11  ;;  %v360_v11 = vstv %s813_s2 }
  0x40   :  { %v96_v3 = vstv %s688_s9 }
  0x41   :  { %v97_v7 = vmul.f32 %v96_v3, %v547_v9 }
  0x43   :  { %v99_v15 = vadd.f32 %v97_v7, %v93_v5  ;;  %v240_v5 = vadd.f32 %v238_v58, %v234_v0  ;;  %v311_v7 = vstv %s752_s13  ;;  %v366_v0 = vstv %s820_s18 }
  0x45   :  { %v105_v17 = vadd.f32 %v103_v4, %v99_v15  ;;  %v44_v4 = vadd.f32 %v42_v54, %v36_v53  ;;  %v285_v15 = vadd.f32 %v283_v62, %v279_v36  ;;  %v834_v22 = vadd.f32 %v250_v63, %v240_v5 }
  0x46   :  { %v94_v53 = vadd.f32 %v92_v52, %v88_v51  ;;  %v98_v54 = vmul.f32 %v96_v3, %v797_v8  ;;  %v357_v63 = vmul.f32 %v356_v42, %v527_v2  ;;  %v361_v3 = vmul.f32 %v360_v11, %v540_v6 }
  0x47   :  { %v728_v16 = vadd.f32 %v115_v10, %v105_v17  ;;  %v315_v10 = vstv %s762_s10  ;;  %v312_v17 = vmul.f32 %v311_v7, %v527_v2  ;;  %v840_v30 = vadd.f32 %v295_v39, %v285_v15 }
  0x48   :  { %v316_v25 = vmul.f32 %v315_v10, %v540_v6  ;;  %v52_v48 = vadd.f32 %v50_v45, %v44_v4  ;;  %v100_v2 = vadd.f32 %v98_v54, %v94_v53  ;;  %v363_v5 = vadd.f32 %v361_v3, %v357_v63  ;;  %v458_v53 = vld [vmem:[%s978_s3 + $0x1] ss:$0 sm:$0xff] }
  0x49   :  { %v178_v6 = vmul.f32 %v176_v18, %v564_v14 }
  0x4a   :  { %v318_v37 = vadd.f32 %v316_v25, %v312_v17 }
  0x4c   :  { %v324_v58 = vadd.f32 %v322_v31, %v318_v37 }
  0x4e   :  { %v330_v39 = vadd.f32 %v328_v55, %v324_v58 }
  0x50   :  { %v872_v45 = vadd.f32 %v340_v44, %v330_v39  ;;  %v456_v44 = vld [vmem:[%s978_s3] ss:$0 sm:$0xff] }
  0x74   :  { %v153_v46 = vpop.permute.xlu2 %152 }
  0x75   :  { %v154_v28 = vrot.slane %v153_v46, 2 }
  0x77   :  { %v155_v62 = vsel %vm63_vm0, %v153_v46, %v154_v28  ;;  %v367_v46 = vmul.f32 %v366_v0, %v547_v9  ;;  %v385_v9 = vmul.f32 %v384_v47, %v579_v20  ;;  %v223_v47 = vmul.f32 %v221_v33, %v564_v14 }
  0x78   :  { %v157_v51 = vadd.f32 %v155_v62, %v145_v59  ;;  %v268_v33 = vmul.f32 %v266_v38, %v564_v14  ;;  %v233_v38 = vmul.f32 %v231_v43, %v797_v8 }
  0x79   :  { %v369_v25 = vadd.f32 %v367_v46, %v363_v5  ;;  %v459_v5 = vld [vmem:[%s978_s3 + $0x3] ss:$0 sm:$0xff] }
  0x7b   :  { %v375_v18 = vadd.f32 %v373_v35, %v369_v25  ;;  %v313_v25 = vmul.f32 %v311_v7, %v564_v14 }
  0x7c   :  { %v165_v29 = vpop.permute.xlu2 %164 }
  0x7d   :  { %v166_v41 = vrot.slane %v165_v29, 2  ;;  %v895_v37 = vadd.f32 %v385_v9, %v375_v18 }
  0x7f   :  { %v167_v17 = vsel %vm63_vm0, %v165_v29, %v166_v41  ;;  %v227_v29 = vmul.f32 %v225_v34, %v579_v20  ;;  %v272_v34 = vmul.f32 %v270_v27, %v579_v20  ;;  %v278_v27 = vmul.f32 %v276_v50, %v797_v8 }
  0x80   :  { %v169_v31 = vadd.f32 %v167_v17, %v157_v51 }
  0x81   :  { %v229_v41 = vadd.f32 %v227_v29, %v223_v47  ;;  %v274_v46 = vadd.f32 %v272_v34, %v268_v33  ;;  %v461_v29 = vld [vmem:[%s978_s3 + $0x5] ss:$0 sm:$0xff] }
  0x83   :  { %v75_v21 = vpop.permute.xlu1 %74  ;;  %v235_v51 = vadd.f32 %v233_v38, %v229_v41 }
  0x84   :  { %v61_v61 = vpop.permute.xlu0 %60  ;;  %v76_v56 = vrot.slane %v75_v21, 2 }
  0x85   :  { %v62_v32 = vrot.slane %v61_v61, 2 }
  0x86   :  { %v77_v4 = vsel %vm63_vm0, %v75_v21, %v76_v56  ;;  %v243_v21 = vpop.permute.xlu2 %242  ;;  %v457_v56 = vld [vmem:[%s978_s3 + $0x2] ss:$0 sm:$0xff] }
  0x87   :  { %v64_v57 = vsel %vm63_vm0, %v61_v61, %v62_v32  ;;  %v184_v32 = vadd.f32 %v182_v49, %v178_v6  ;;  %v280_v49 = vadd.f32 %v278_v27, %v274_v46 }
  0x88   :  { %v66_v1 = vadd.f32 %v64_v57, %v52_v48 }
  0x89   :  { %v190_v62 = vadd.f32 %v188_v19, %v184_v32  ;;  %v460_v32 = vld [vmem:[%s978_s3 + $0x4] ss:$0 sm:$0xff] }
  0x8a   :  { %v79_v60 = vadd.f32 %v77_v4, %v66_v1 }
  0x8b   :  { %v120_v36 = vpop.permute.xlu1 %119 }
  0x8c   :  { %v121_v52 = vrot.slane %v120_v36, 2  ;;  %v108_v15 = vpop.permute.xlu0 %107  ;;  %v80_v48 = vmax.f32 %v591_v26, %v79_v60  ;;  %v170_v26 = vmax.f32 %v716_v12, %v169_v31  ;;  %v244_v12 = vrot.slane %v243_v21, 2 }
  0x8d   :  { %v109_v13 = vrot.slane %v108_v15, 2  ;;  %v317_v60 = vmul.f32 %v315_v10, %v579_v20  ;;  %v323_v10 = vmul.f32 %v321_v24, %v797_v8 }
  0x8e   :  { %v122_v28 = vsel %vm63_vm0, %v120_v36, %v121_v52  ;;  %v83_v39 = vmul.f32 %v456_v44, %v80_v48  ;;  %v173_v4 = vmul.f32 %v457_v56, %v170_v26 }
  0x8f   :  { %v110_v61 = vsel %vm63_vm0, %v108_v15, %v109_v13  ;;  %v245_v15 = vsel %vm63_vm0, %v243_v21, %v244_v12  ;;  %v319_v19 = vadd.f32 %v317_v60, %v313_v25 }
  0x90   :  { %v112_v55 = vadd.f32 %v110_v61, %v100_v2  ;;  %v247_v18 = vadd.f32 %v245_v15, %v235_v51 }
  0x91   :  { %v325_v56 = vadd.f32 %v323_v10, %v319_v19 }
  0x92   :  { %v124_v23 = vadd.f32 %v122_v28, %v112_v55 }
  0x93   :  { %v210_v54 = vpop.permute.xlu1 %209 }
  0x94   :  { %v125_v57 = vmax.f32 %v728_v16, %v124_v23  ;;  %v211_v58 = vrot.slane %v210_v54, 2  ;;  %v198_v59 = vpop.permute.xlu0 %197  ;;  %v300_v16 = vpop.permute.xlu2 %299  ;;  %v362_v23 = vmul.f32 %v360_v11, %v579_v20 }
  0x95   :  { %v199_v63 = vrot.slane %v198_v59, 2  ;;  %v301_v52 = vrot.slane %v300_v16, 2 }
  0x96   :  { %v128_v3 = vmul.f32 %v458_v53, %v125_v57  ;;  %v212_v35 = vsel %vm63_vm0, %v210_v54, %v211_v58  ;;  %v358_v53 = vmul.f32 %v356_v42, %v564_v14 }
  0x97   :  { %v200_v1 = vsel %vm63_vm0, %v198_v59, %v199_v63  ;;  %v302_v31 = vsel %vm63_vm0, %v300_v16, %v301_v52 }
  0x98   :  { %v129_v36 = vadd.f32 %v128_v3, %v83_v39  ;;  %v202_v2 = vadd.f32 %v200_v1, %v190_v62  ;;  %v364_v62 = vadd.f32 %v362_v23, %v358_v53  ;;  %v462_v3 = vld [vmem:[%s978_s3 + $0x6] ss:$0 sm:$0xff] }
  0x9a   :  { %v214_v43 = vadd.f32 %v212_v35, %v202_v2  ;;  %v174_v50 = vadd.f32 %v173_v4, %v129_v36  ;;  %v463_v4 = vld [vmem:[%s978_s3 + $0x7] ss:$0 sm:$0xff] }
  0x9b   :  { %v288_v6 = vpop.permute.xlu1 %287 }
  0x9c   :  { %v215_v9 = vmax.f32 %v764_v40, %v214_v43  ;;  %v289_v17 = vrot.slane %v288_v6, 2  ;;  %v255_v13 = vpop.permute.xlu0 %254  ;;  %v378_v57 = vpop.permute.xlu2 %377 }
  0x9d   :  { %v256_v28 = vrot.slane %v255_v13, 2  ;;  %v379_v20 = vrot.slane %v378_v57, 2 }
  0x9e   :  { %v218_v61 = vmul.f32 %v459_v5, %v215_v9  ;;  %v290_v21 = vsel %vm63_vm0, %v288_v6, %v289_v17 }
  0x9f   :  { %v292_v55 = vadd.f32 %v290_v21, %v280_v49  ;;  %v257_v40 = vsel %vm63_vm0, %v255_v13, %v256_v28  ;;  %v380_v38 = vsel %vm63_vm0, %v378_v57, %v379_v20 }
  0xa0   :  { %v259_v7 = vadd.f32 %v257_v40, %v247_v18  ;;  %v219_v47 = vadd.f32 %v218_v61, %v174_v50 }
  0xa1   :  { %v304_v44 = vadd.f32 %v302_v31, %v292_v55 }
  0xa2   :  { %v260_v48 = vmax.f32 %v834_v22, %v259_v7  ;;  %v368_v22 = vmul.f32 %v366_v0, %v797_v8 }
  0xa3   :  { %v305_v54 = vmax.f32 %v840_v30, %v304_v44  ;;  %v345_v33 = vpop.permute.xlu1 %344 }
  0xa4   :  { %v263_v34 = vmul.f32 %v460_v32, %v260_v48  ;;  %v333_v24 = vpop.permute.xlu0 %332  ;;  %v346_v26 = vrot.slane %v345_v33, 2  ;;  %v370_v39 = vadd.f32 %v368_v22, %v364_v62 }
  0xa5   :  { %v308_v58 = vmul.f32 %v461_v29, %v305_v54  ;;  %v334_v59 = vrot.slane %v333_v24, 2 }
  0xa6   :  { %v264_v63 = vadd.f32 %v263_v34, %v219_v47  ;;  %v347_v42 = vsel %vm63_vm0, %v345_v33, %v346_v26  ;;  %v382_v0 = vadd.f32 %v380_v38, %v370_v39 }
  0xa7   :  { %v335_v14 = vsel %vm63_vm0, %v333_v24, %v334_v59 }
  0xa8   :  { %v337_v11 = vadd.f32 %v335_v14, %v325_v56  ;;  %v309_v30 = vadd.f32 %v308_v58, %v264_v63 }
  0xaa   :  { %v349_v41 = vadd.f32 %v347_v42, %v337_v11 }
  0xac   :  { %v350_v27 = vmax.f32 %v872_v45, %v349_v41  ;;  %v390_v35 = vpop.permute.xlu0 %389  ;;  %v406_v45 = vstv %s985_s15 }
  0xad   :  { %v391_v8 = vrot.slane %v390_v35, 2 }
  0xae   :  { %v353_v1 = vmul.f32 %v462_v3, %v350_v27 }
  0xaf   :  { %v392_v12 = vsel %vm63_vm0, %v390_v35, %v391_v8 }
  0xb0   :  { %v394_v46 = vadd.f32 %v392_v12, %v382_v0  ;;  %v354_v16 = vadd.f32 %v353_v1, %v309_v30 }
  0xb2   :  { %v395_v36 = vmax.f32 %v895_v37, %v394_v46 }
  0xb4   :  { %v398_v2 = vmul.f32 %v463_v4, %v395_v36 }
  0xb6   :  { %v399_v5 = vadd.f32 %v398_v2, %v354_v16 }
  0xb8   :  { %v401_v43 = vsel %vm400_vm1, %v399_v5, 0.0 }
  0xb9   :  { %402 = vadd.xlane.f32.xlu1 %v401_v43 }
 0x12c   :  { %v403_v51 = vpop.xlane.xlu1 %402 }
 0x12d   :  { %v407_v52 = vadd.f32 %v406_v45, %v403_v51 }
 0x12f   :  { %409 = vst.msk [vmem:[%s986_s17] sm:$0x3] %vm408_vm2, %v407_v52 }
 0x130   :  { %414 = vsyncpa [#allocation4], 1 }

</bundles_post_ra>
